<compile_context>
chip_gen: v7x
topology: tpu7x:2x2x1
jax: 0.10.0
libtpu: 0.0.40
codegen_flags: <defaults>
</compile_context>

<pallas_src>
import jax
import jax.numpy as jnp
from jax import lax
from jax.experimental import pallas as pl
from jax.experimental.pallas import tpu as pltpu

LN_EPS = 1e-12  # espnet LayerNorm uses eps=1e-12


def _round_up(a, b):
    return (a + b - 1) // b * b


def _make_kernel(*, seq_len, tt, pad, hb, k_taps):
    """Build the CSGU kernel for a fixed (static) tiling configuration."""

    def kernel(xr_ref, xgc_ref, xgp_ref, xgn_ref, ga_ref,
               gamma_ref, beta_ref, convw_ref, convb_ref, linw_ref, linb_ref,
               out_ref):
        t = pl.program_id(1)

        # ---- assemble the haloed gating tile: (tt + 2*pad, C), f32 ----
        center = xgc_ref[0].astype(jnp.float32)                       # (tt, C)
        if pad > 0:
            prev_tail = xgp_ref[0, hb - pad:, :].astype(jnp.float32)  # (pad, C)
            next_head = xgn_ref[0, :pad, :].astype(jnp.float32)       # (pad, C)
            xg = jnp.concatenate([prev_tail, center, next_head], axis=0)
        else:
            xg = center
        tth = tt + 2 * pad

        # ---- LayerNorm over channels (biased variance, torch semantics) ----
        mean = jnp.mean(xg, axis=-1, keepdims=True)
        var = jnp.mean(jnp.square(xg - mean), axis=-1, keepdims=True)
        xg = (xg - mean) * lax.rsqrt(var + LN_EPS)                    # rsqrt -> EUP
        xg = xg * gamma_ref[...] + beta_ref[...]                      # (1,C) broadcast

        # ---- single row-validity mask: zero rows outside the real sequence so
        # the depthwise conv sees 'same' zero padding (also handles clamped halo
        # blocks at the sequence ends and ragged-T tail padding). ----
        g = t * tt - pad + lax.broadcasted_iota(jnp.int32, (tth, 1), 0)
        xg = jnp.where((g >= 0) & (g < seq_len), xg, 0.0)

        # ---- depthwise 1-D conv along time: out[i] = b + sum_k w[k]*xg[i+k] ----
        w = convw_ref[...]                                            # (K, C)
        acc = jnp.zeros((tt, xg.shape[1]), jnp.float32)
        for k in range(k_taps):                                       # K static -> unrolled
            acc = acc + w[k:k + 1, :] * xg[k:k + tt, :]
        acc = acc + convb_ref[...]

        # ---- post-conv linear on the MXU: bf16 inputs, f32 accumulation ----
        y = jnp.dot(acc.astype(jnp.bfloat16), linw_ref[...],
                    preferred_element_type=jnp.float32)
        y = y + linb_ref[...]

        # ---- gate_add, identity gate activation, eval-mode dropout (= id) ----
        y = y + ga_ref[0].astype(jnp.float32)

        # Residual half is only touched here.
        out_ref[0] = (xr_ref[0].astype(jnp.float32) * y).astype(out_ref.dtype)

    return kernel


def csgu_forward(x, gate_add, params, *, time_tile=256):
    """x: (N, T, D), gate_add: (N, T, D//2) or None -> (N, T, D//2)."""
    N, T, D = x.shape
    C = D // 2
    K = params["conv_w"].shape[0]
    assert K % 2 == 1, "Conv1d 'same' padding in the module requires odd kernel_size"
    pad = (K - 1) // 2

    # halo block rows (multiple of 8, >= pad); time tile multiple of halo block
    hb = max(8, _round_up(max(pad, 1), 8))
    tt = min(time_tile, _round_up(T, 8))
    tt = max(hb, _round_up(tt, hb))
    Tp = _round_up(T, tt)
    nT = Tp // tt
    R = tt // hb
    n_hblk = Tp // hb

    if gate_add is None:
        gate_add = jnp.zeros((N, T, C), x.dtype)

    # Lane-dense fast path: feed x directly and split r/g with channel-blocked
    # specs (no wrapper copy).  Fallback: split (and time-pad) in the wrapper.
    direct = (C % 128 == 0) and (Tp == T)
    if direct:
        xr_op = xgc_op = xgp_op = xgn_op = x
        ga_op = gate_add
        ch_r, ch_g = 0, 1        # channel-block index (block width C) inside x
    else:
        x_r = x[..., :C]
        x_g = x[..., C:]
        ga_op = gate_add
        if Tp != T:
            tp_pad = ((0, 0), (0, Tp - T), (0, 0))
            x_r = jnp.pad(x_r, tp_pad)
            x_g = jnp.pad(x_g, tp_pad)
            ga_op = jnp.pad(ga_op, tp_pad)
        xr_op, xgc_op, xgp_op, xgn_op = x_r, x_g, x_g, x_g
        ch_r, ch_g = 0, 0

    kernel = _make_kernel(seq_len=T, tt=tt, pad=pad, hb=hb, k_taps=K)

    in_specs = [
        # residual half
        pl.BlockSpec((1, tt, C), lambda n, t: (n, t, ch_r)),
        # gating half: center tile
        pl.BlockSpec((1, tt, C), lambda n, t: (n, t, ch_g)),
        # gating half: previous-halo block (clamped at the left edge)
        pl.BlockSpec((1, hb, C),
                     lambda n, t: (n, jnp.maximum(t * R - 1, 0), ch_g)),
        # gating half: next-halo block (clamped at the right edge)
        pl.BlockSpec((1, hb, C),
                     lambda n, t: (n, jnp.minimum((t + 1) * R, n_hblk - 1), ch_g)),
        # gate_add
        pl.BlockSpec((1, tt, C), lambda n, t: (n, t, 0)),
        # parameters (constant block index -> DMA'd once, resident across grid)
        pl.BlockSpec((1, C), lambda n, t: (0, 0)),   # LN gamma
        pl.BlockSpec((1, C), lambda n, t: (0, 0)),   # LN beta
        pl.BlockSpec((K, C), lambda n, t: (0, 0)),   # depthwise conv weight
        pl.BlockSpec((1, C), lambda n, t: (0, 0)),   # conv bias
        pl.BlockSpec((C, C), lambda n, t: (0, 0)),   # linear weight (bf16, (in,out))
        pl.BlockSpec((1, C), lambda n, t: (0, 0)),   # linear bias
    ]

    itemsize = x.dtype.itemsize
    flops = 2 * N * Tp * C * C + 2 * N * Tp * C * K + 12 * N * Tp * C
    bytes_accessed = (itemsize * N * Tp * C * 4            # x_r, x_g, gate, out
                      + itemsize * N * nT * 2 * hb * C     # halo blocks
                      + 2 * C * C + 4 * C * (K + 4))       # params
    cost = pl.CostEstimate(flops=int(flops), transcendentals=int(N * Tp),
                           bytes_accessed=int(bytes_accessed))

    out = pl.pallas_call(
        kernel,
        out_shape=jax.ShapeDtypeStruct((N, Tp, C), x.dtype),
        grid=(N, nT),
        in_specs=in_specs,
        out_specs=pl.BlockSpec((1, tt, C), lambda n, t: (n, t, 0)),
        compiler_params=pltpu.CompilerParams(
            dimension_semantics=("parallel", "parallel")),
        cost_estimate=cost,
    )(xr_op, xgc_op, xgp_op, xgn_op, ga_op,
      params["ln_w"], params["ln_b"], params["conv_w"], params["conv_b"],
      params["lin_w_t"].astype(jnp.bfloat16), params["lin_b"])

    return out if Tp == T else out[:, :T, :]


# ----------------------------------------------------------------------------
# Pure-JAX reference (independent implementation, uses lax.conv_general_dilated)
# ----------------------------------------------------------------------------
def csgu_reference(x, gate_add, params, *, bf16_linear=False):
    N, T, D = x.shape
    C = D // 2
    x_r, x_g = x[..., :C], x[..., C:]
    x_g = x_g.astype(jnp.float32)
    mean = jnp.mean(x_g, -1, keepdims=True)
    var = jnp.mean((x_g - mean) ** 2, -1, keepdims=True)
    x_g = (x_g - mean) / jnp.sqrt(var + LN_EPS)
    x_g = x_g * params["ln_w"][0] + params["ln_b"][0]
    K = params["conv_w"].shape[0]
    pad = (K - 1) // 2
    w = jnp.transpose(params["conv_w"], (1, 0))[:, None, :]   # (C, 1, K) torch layout
    y = lax.conv_general_dilated(
        jnp.transpose(x_g, (0, 2, 1)), w, (1,), [(pad, pad)],
        feature_group_count=C, dimension_numbers=("NCH", "OIH", "NCH"))
    x_g = jnp.transpose(y, (0, 2, 1)) + params["conv_b"][0]
    if bf16_linear:
        x_g = jnp.dot(x_g.astype(jnp.bfloat16),
                      params["lin_w_t"].astype(jnp.bfloat16),
                      preferred_element_type=jnp.float32)
    else:
        x_g = x_g @ params["lin_w_t"]
    x_g = x_g + params["lin_b"][0]
    if gate_add is not None:
        x_g = x_g + gate_add
    return x_r * x_g


def _make_params(key, C, K):
    k1, k2, k3, k4 = jax.random.split(key, 4)
    # (espnet init would use std=1e-6 weights / ones biases; use std=0.1 so the
    #  conv and matmul paths are numerically exercised, and a nonzero LN beta so
    #  the boundary masking is exercised.)
    return {
        "ln_w": 1.0 + 0.1 * jax.random.normal(k1, (1, C), jnp.float32),
        "ln_b": 0.2 * jax.random.normal(k2, (1, C), jnp.float32),
        "conv_w": 0.1 * jax.random.normal(k3, (K, C), jnp.float32),   # taps-major (K, C)
        "conv_b": jnp.ones((1, C), jnp.float32),
        "lin_w_t": 0.1 * jax.random.normal(k4, (C, C), jnp.float32),  # W.T, (in, out)
        "lin_b": jnp.ones((1, C), jnp.float32),
    }


def _check(key, N, T, D, K, time_tile):
    C = D // 2
    kx, kg, kp = jax.random.split(key, 3)
    x = jax.random.normal(kx, (N, T, D), jnp.float32)
    gate_add = 0.1 * jax.random.normal(kg, (N, T, C), jnp.float32)
    params = _make_params(kp, C, K)

    out = csgu_forward(x, gate_add, params, time_tile=time_tile)
    jax.block_until_ready(out)
    assert out.shape == (N, T, C)

    # Tight check vs a reference that mirrors the kernel's bf16 linear.
    ref16 = csgu_reference(x, gate_add, params, bf16_linear=True)
    max16 = float(jnp.max(jnp.abs(out - ref16)))
    mean16 = float(jnp.mean(jnp.abs(out - ref16)))
    assert jnp.allclose(out, ref16, atol=2e-2, rtol=2e-2), max16
    assert mean16 < 1e-3, mean16

    # Loose sanity check vs the full-f32 reference (kernel intentionally runs
    # the post-conv linear in bf16 on the MXU).
    ref32 = csgu_reference(x, gate_add, params, bf16_linear=False)
    assert float(jnp.max(jnp.abs(out - ref32))) < 0.3


if __name__ == "__main__":
    key = jax.random.PRNGKey(0)
    k1, k2, k3 = jax.random.split(key, 3)
    # tiny shape (single tile, wrapper-split path)
    _check(k1, N=2, T=16, D=32, K=3, time_tile=256)
    # lane-dense multi-tile shape (direct channel-blocked path, conv halo across tiles)
    _check(k2, N=2, T=256, D=256, K=7, time_tile=64)
    # ragged T (tail padding + wrapper-split path, masked tail)
    _check(k3, N=1, T=200, D=256, K=7, time_tile=64)
    # TODO(synk): training-mode dropout (pltpu.prng_seed/prng_random_bits) and
    # non-identity gate activations are not implemented; forward is eval-mode
    # with gate_activation='identity', use_linear_after_conv=True.
    print("KERNEL_OK")
</pallas_src>

<mosaic_0001>
module attributes {stable_mosaic.version = 11 : i64} {
  func.func @kernel(%arg0: i32, %arg1: i32, %arg2: memref<1x16x16xf32, #tpu.memory_space<vmem>>, %arg3: memref<1x16x16xf32, #tpu.memory_space<vmem>>, %arg4: memref<1x8x16xf32, #tpu.memory_space<vmem>>, %arg5: memref<1x8x16xf32, #tpu.memory_space<vmem>>, %arg6: memref<1x16x16xf32, #tpu.memory_space<vmem>>, %arg7: memref<1x16xf32, #tpu.memory_space<vmem>>, %arg8: memref<1x16xf32, #tpu.memory_space<vmem>>, %arg9: memref<3x16xf32, #tpu.memory_space<vmem>>, %arg10: memref<1x16xf32, #tpu.memory_space<vmem>>, %arg11: memref<16x16xbf16, #tpu.memory_space<vmem>>, %arg12: memref<1x16xf32, #tpu.memory_space<vmem>>, %arg13: memref<1x16x16xf32, #tpu.memory_space<vmem>>) attributes {dimension_semantics = [#tpu.dimension_semantics<parallel>, #tpu.dimension_semantics<parallel>], iteration_bounds = array<i64: 2, 1>, scalar_prefetch = 0 : i64, scratch_operands = 0 : i64, tpu.core_type = #tpu.core_type<tc>, window_params = [{transform_indices = @transform_0, window_bounds = array<i64: 1, 16, 16>}, {transform_indices = @transform_1, window_bounds = array<i64: 1, 16, 16>}, {transform_indices = @transform_2, window_bounds = array<i64: 1, 8, 16>}, {transform_indices = @transform_3, window_bounds = array<i64: 1, 8, 16>}, {transform_indices = @transform_4, window_bounds = array<i64: 1, 16, 16>}, {pipeline_mode = #tpu.pipeline_mode<synchronous>, transform_indices = @transform_5, window_bounds = array<i64: 1, 16>}, {pipeline_mode = #tpu.pipeline_mode<synchronous>, transform_indices = @transform_6, window_bounds = array<i64: 1, 16>}, {pipeline_mode = #tpu.pipeline_mode<synchronous>, transform_indices = @transform_7, window_bounds = array<i64: 3, 16>}, {pipeline_mode = #tpu.pipeline_mode<synchronous>, transform_indices = @transform_8, window_bounds = array<i64: 1, 16>}, {pipeline_mode = #tpu.pipeline_mode<synchronous>, transform_indices = @transform_9, window_bounds = array<i64: 16, 16>}, {pipeline_mode = #tpu.pipeline_mode<synchronous>, transform_indices = @transform_10, window_bounds = array<i64: 1, 16>}, {transform_indices = @transform_11, window_bounds = array<i64: 1, 16, 16>}]} {
    %c0 = arith.constant 0 : index
    %c0_0 = arith.constant 0 : index
    %c0_1 = arith.constant 0 : index
    %0 = vector.load %arg3[%c0, %c0_0, %c0_1] : memref<1x16x16xf32, #tpu.memory_space<vmem>>, vector<1x16x16xf32>
    %1 = vector.shape_cast %0 : vector<1x16x16xf32> to vector<16x16xf32>
    %c0_2 = arith.constant 0 : index
    %c7 = arith.constant 7 : index
    %c0_3 = arith.constant 0 : index
    %2 = vector.load %arg4[%c0_2, %c7, %c0_3] : memref<1x8x16xf32, #tpu.memory_space<vmem>>, vector<1x1x16xf32>
    %3 = vector.shape_cast %2 : vector<1x1x16xf32> to vector<1x16xf32>
    %c0_4 = arith.constant 0 : index
    %c0_5 = arith.constant 0 : index
    %c0_6 = arith.constant 0 : index
    %4 = vector.load %arg5[%c0_4, %c0_5, %c0_6] : memref<1x8x16xf32, #tpu.memory_space<vmem>>, vector<1x1x16xf32>
    %5 = vector.shape_cast %4 : vector<1x1x16xf32> to vector<1x16xf32>
    %6 = tpu.concatenate %3, %1, %5 in 0 : vector<1x16xf32>, vector<16x16xf32>, vector<1x16xf32> -> vector<18x16xf32>
    %cst = arith.constant dense<0.000000e+00> : vector<18xf32>
    %7 = vector.multi_reduction <add>, %6, %cst [1] : vector<18x16xf32> to vector<18xf32>
    %8 = vector.shape_cast %7 : vector<18xf32> to vector<18x1xf32>
    %cst_7 = arith.constant 1.600000e+01 : f32
    %9 = vector.broadcast %cst_7 : f32 to vector<18x1xf32>
    %10 = arith.divf %8, %9 : vector<18x1xf32>
    %11 = vector.broadcast %10 : vector<18x1xf32> to vector<18x16xf32>
    %12 = arith.subf %6, %11 : vector<18x16xf32>
    %13 = arith.mulf %12, %12 : vector<18x16xf32>
    %cst_8 = arith.constant dense<0.000000e+00> : vector<18xf32>
    %14 = vector.multi_reduction <add>, %13, %cst_8 [1] : vector<18x16xf32> to vector<18xf32>
    %15 = vector.shape_cast %14 : vector<18xf32> to vector<18x1xf32>
    %cst_9 = arith.constant 1.600000e+01 : f32
    %16 = vector.broadcast %cst_9 : f32 to vector<18x1xf32>
    %17 = arith.divf %15, %16 : vector<18x1xf32>
    %18 = vector.broadcast %10 : vector<18x1xf32> to vector<18x16xf32>
    %19 = arith.subf %6, %18 : vector<18x16xf32>
    %cst_10 = arith.constant 9.99999996E-13 : f32
    %20 = vector.broadcast %cst_10 : f32 to vector<18x1xf32>
    %21 = arith.addf %17, %20 : vector<18x1xf32>
    %22 = math.rsqrt %21 : vector<18x1xf32>
    %23 = vector.broadcast %22 : vector<18x1xf32> to vector<18x16xf32>
    %24 = arith.mulf %19, %23 : vector<18x16xf32>
    %c0_11 = arith.constant 0 : index
    %c0_12 = arith.constant 0 : index
    %25 = vector.load %arg7[%c0_11, %c0_12] : memref<1x16xf32, #tpu.memory_space<vmem>>, vector<1x16xf32>
    %26 = vector.broadcast %25 : vector<1x16xf32> to vector<18x16xf32>
    %27 = arith.mulf %24, %26 : vector<18x16xf32>
    %c0_13 = arith.constant 0 : index
    %c0_14 = arith.constant 0 : index
    %28 = vector.load %arg8[%c0_13, %c0_14] : memref<1x16xf32, #tpu.memory_space<vmem>>, vector<1x16xf32>
    %29 = vector.broadcast %28 : vector<1x16xf32> to vector<18x16xf32>
    %30 = arith.addf %27, %29 : vector<18x16xf32>
    %c16_i32 = arith.constant 16 : i32
    %31 = arith.muli %arg1, %c16_i32 : i32
    %c1_i32 = arith.constant 1 : i32
    %32 = arith.subi %31, %c1_i32 : i32
    %33 = tpu.iota {dimensions = array<i32: 0>} : vector<18x1xi32>
    %34 = vector.broadcast %32 : i32 to vector<18x1xi32>
    %35 = arith.addi %34, %33 : vector<18x1xi32>
    %c0_i32 = arith.constant 0 : i32
    %36 = vector.broadcast %c0_i32 : i32 to vector<18x1xi32>
    %37 = arith.cmpi sge, %35, %36 : vector<18x1xi32>
    %c16_i32_15 = arith.constant 16 : i32
    %38 = vector.broadcast %c16_i32_15 : i32 to vector<18x1xi32>
    %39 = arith.cmpi slt, %35, %38 : vector<18x1xi32>
    %40 = arith.andi %37, %39 : vector<18x1xi1>
    %cst_16 = arith.constant 0.000000e+00 : f32
    %41 = vector.shape_cast %40 : vector<18x1xi1> to vector<18x1xi1>
    %42 = vector.broadcast %41 : vector<18x1xi1> to vector<18x16xi1>
    %43 = vector.broadcast %cst_16 : f32 to vector<18x16xf32>
    %44 = arith.select %42, %30, %43 : vector<18x16xi1>, vector<18x16xf32>
    %c0_17 = arith.constant 0 : index
    %c0_18 = arith.constant 0 : index
    %45 = vector.load %arg9[%c0_17, %c0_18] : memref<3x16xf32, #tpu.memory_space<vmem>>, vector<3x16xf32>
    %cst_19 = arith.constant 0.000000e+00 : f32
    %46 = vector.broadcast %cst_19 : f32 to vector<16x16xf32>
    %47 = vector.extract_strided_slice %45 {offsets = [0, 0], sizes = [1, 16], strides = [1, 1]} : vector<3x16xf32> to vector<1x16xf32>
    %48 = vector.extract_strided_slice %44 {offsets = [0, 0], sizes = [16, 16], strides = [1, 1]} : vector<18x16xf32> to vector<16x16xf32>
    %49 = vector.broadcast %47 : vector<1x16xf32> to vector<16x16xf32>
    %50 = arith.mulf %49, %48 : vector<16x16xf32>
    %51 = arith.addf %46, %50 : vector<16x16xf32>
    %52 = vector.extract_strided_slice %45 {offsets = [1, 0], sizes = [1, 16], strides = [1, 1]} : vector<3x16xf32> to vector<1x16xf32>
    %53 = vector.extract_strided_slice %44 {offsets = [1, 0], sizes = [16, 16], strides = [1, 1]} : vector<18x16xf32> to vector<16x16xf32>
    %54 = vector.broadcast %52 : vector<1x16xf32> to vector<16x16xf32>
    %55 = arith.mulf %54, %53 : vector<16x16xf32>
    %56 = arith.addf %51, %55 : vector<16x16xf32>
    %57 = vector.extract_strided_slice %45 {offsets = [2, 0], sizes = [1, 16], strides = [1, 1]} : vector<3x16xf32> to vector<1x16xf32>
    %58 = vector.extract_strided_slice %44 {offsets = [2, 0], sizes = [16, 16], strides = [1, 1]} : vector<18x16xf32> to vector<16x16xf32>
    %59 = vector.broadcast %57 : vector<1x16xf32> to vector<16x16xf32>
    %60 = arith.mulf %59, %58 : vector<16x16xf32>
    %61 = arith.addf %56, %60 : vector<16x16xf32>
    %c0_20 = arith.constant 0 : index
    %c0_21 = arith.constant 0 : index
    %62 = vector.load %arg10[%c0_20, %c0_21] : memref<1x16xf32, #tpu.memory_space<vmem>>, vector<1x16xf32>
    %63 = vector.broadcast %62 : vector<1x16xf32> to vector<16x16xf32>
    %64 = arith.addf %61, %63 : vector<16x16xf32>
    %65 = arith.truncf %64 : vector<16x16xf32> to vector<16x16xbf16>
    %c0_22 = arith.constant 0 : index
    %c0_23 = arith.constant 0 : index
    %66 = vector.load %arg11[%c0_22, %c0_23] : memref<16x16xbf16, #tpu.memory_space<vmem>>, vector<16x16xbf16>
    %cst_24 = arith.constant dense<0.000000e+00> : vector<16x16xf32>
    %67 = tpu.matmul %65, %66, %cst_24 {dimension_numbers = #tpu.dot_dimension_numbers<[1], [0], [0], [1], [0, 0, 1, 1], [], []>} : vector<16x16xbf16>, vector<16x16xbf16>, vector<16x16xf32> -> vector<16x16xf32>
    %c0_25 = arith.constant 0 : index
    %c0_26 = arith.constant 0 : index
    %68 = vector.load %arg12[%c0_25, %c0_26] : memref<1x16xf32, #tpu.memory_space<vmem>>, vector<1x16xf32>
    %69 = vector.broadcast %68 : vector<1x16xf32> to vector<16x16xf32>
    %70 = arith.addf %67, %69 : vector<16x16xf32>
    %c0_27 = arith.constant 0 : index
    %c0_28 = arith.constant 0 : index
    %c0_29 = arith.constant 0 : index
    %71 = vector.load %arg6[%c0_27, %c0_28, %c0_29] : memref<1x16x16xf32, #tpu.memory_space<vmem>>, vector<1x16x16xf32>
    %72 = vector.shape_cast %71 : vector<1x16x16xf32> to vector<16x16xf32>
    %73 = arith.addf %70, %72 : vector<16x16xf32>
    %c0_30 = arith.constant 0 : index
    %c0_31 = arith.constant 0 : index
    %c0_32 = arith.constant 0 : index
    %74 = vector.load %arg2[%c0_30, %c0_31, %c0_32] : memref<1x16x16xf32, #tpu.memory_space<vmem>>, vector<1x16x16xf32>
    %75 = vector.shape_cast %74 : vector<1x16x16xf32> to vector<16x16xf32>
    %76 = arith.mulf %75, %73 : vector<16x16xf32>
    %c0_33 = arith.constant 0 : index
    %c0_34 = arith.constant 0 : index
    %c0_35 = arith.constant 0 : index
    %77 = vector.load %arg13[%c0_33, %c0_34, %c0_35] : memref<1x16x16xf32, #tpu.memory_space<vmem>>, vector<1x16x16xf32>
    %78 = vector.shape_cast %77 : vector<1x16x16xf32> to vector<16x16xf32>
    %79 = vector.shape_cast %76 : vector<16x16xf32> to vector<1x16x16xf32>
    tpu.vector_store %arg13[%c0_33, %c0_34, %c0_35], %79 {strides = array<i32>} : memref<1x16x16xf32, #tpu.memory_space<vmem>>, vector<1x16x16xf32>,
    return
  }
  func.func @transform_0(%arg0: i32, %arg1: i32) -> (i32, i32, i32) {
    %c0_i32 = arith.constant 0 : i32
    %c0_i32_0 = arith.constant 0 : i32
    return %arg0, %arg1, %c0_i32 : i32, i32, i32
  }
  func.func @transform_1(%arg0: i32, %arg1: i32) -> (i32, i32, i32) {
    %c0_i32 = arith.constant 0 : i32
    %c0_i32_0 = arith.constant 0 : i32
    return %arg0, %arg1, %c0_i32 : i32, i32, i32
  }
  func.func @transform_2(%arg0: i32, %arg1: i32) -> (i32, i32, i32) {
    %c2_i32 = arith.constant 2 : i32
    %0 = arith.muli %arg1, %c2_i32 : i32
    %c1_i32 = arith.constant 1 : i32
    %1 = arith.subi %0, %c1_i32 : i32
    %c0_i32 = arith.constant 0 : i32
    %2 = arith.maxsi %1, %c0_i32 : i32
    %c0_i32_0 = arith.constant 0 : i32
    %c0_i32_1 = arith.constant 0 : i32
    return %arg0, %2, %c0_i32_0 : i32, i32, i32
  }
  func.func @transform_3(%arg0: i32, %arg1: i32) -> (i32, i32, i32) {
    %c1_i32 = arith.constant 1 : i32
    %0 = arith.addi %arg1, %c1_i32 : i32
    %c2_i32 = arith.constant 2 : i32
    %1 = arith.muli %0, %c2_i32 : i32
    %c1_i32_0 = arith.constant 1 : i32
    %2 = arith.minsi %1, %c1_i32_0 : i32
    %c0_i32 = arith.constant 0 : i32
    %c0_i32_1 = arith.constant 0 : i32
    return %arg0, %2, %c0_i32 : i32, i32, i32
  }
  func.func @transform_4(%arg0: i32, %arg1: i32) -> (i32, i32, i32) {
    %c0_i32 = arith.constant 0 : i32
    %c0_i32_0 = arith.constant 0 : i32
    return %arg0, %arg1, %c0_i32 : i32, i32, i32
  }
  func.func @transform_5(%arg0: i32, %arg1: i32) -> (i32, i32) {
    %c0_i32 = arith.constant 0 : i32
    %c0_i32_0 = arith.constant 0 : i32
    %c0_i32_1 = arith.constant 0 : i32
    return %c0_i32, %c0_i32_0 : i32, i32
  }
  func.func @transform_6(%arg0: i32, %arg1: i32) -> (i32, i32) {
    %c0_i32 = arith.constant 0 : i32
    %c0_i32_0 = arith.constant 0 : i32
    %c0_i32_1 = arith.constant 0 : i32
    return %c0_i32, %c0_i32_0 : i32, i32
  }
  func.func @transform_7(%arg0: i32, %arg1: i32) -> (i32, i32) {
    %c0_i32 = arith.constant 0 : i32
    %c0_i32_0 = arith.constant 0 : i32
    %c0_i32_1 = arith.constant 0 : i32
    return %c0_i32, %c0_i32_0 : i32, i32
  }
  func.func @transform_8(%arg0: i32, %arg1: i32) -> (i32, i32) {
    %c0_i32 = arith.constant 0 : i32
    %c0_i32_0 = arith.constant 0 : i32
    %c0_i32_1 = arith.constant 0 : i32
    return %c0_i32, %c0_i32_0 : i32, i32
  }
  func.func @transform_9(%arg0: i32, %arg1: i32) -> (i32, i32) {
    %c0_i32 = arith.constant 0 : i32
    %c0_i32_0 = arith.constant 0 : i32
    %c0_i32_1 = arith.constant 0 : i32
    return %c0_i32, %c0_i32_0 : i32, i32
  }
  func.func @transform_10(%arg0: i32, %arg1: i32) -> (i32, i32) {
    %c0_i32 = arith.constant 0 : i32
    %c0_i32_0 = arith.constant 0 : i32
    %c0_i32_1 = arith.constant 0 : i32
    return %c0_i32, %c0_i32_0 : i32, i32
  }
  func.func @transform_11(%arg0: i32, %arg1: i32) -> (i32, i32, i32) {
    %c0_i32 = arith.constant 0 : i32
    %c0_i32_0 = arith.constant 0 : i32
    return %arg0, %arg1, %c0_i32 : i32, i32, i32
  }
}

</mosaic_0001>

<bundles_post_ra>
// kernel: tpu_custom_call.1
= control target key start
LH: loop header
LB: loop body
LE: loop exit
PB: predicated region body
PF: predicated region fallthrough
CT: control target
= control target key end

     0   :  { %s1904_s0 = inlined_call_operand.hbm [shape: f32[2,16,16], index: 0, kind: input, shape index: {}]   ;;  %s1905_s1 = inlined_call_operand.hbm [shape: f32[2,16,16], index: 1, kind: input, shape index: {}]   ;;  %s1906_s2 = inlined_call_operand.hbm [shape: f32[2,16,16], index: 2, kind: input, shape index: {}]   ;;  %s1907_s3 = inlined_call_operand.hbm [shape: f32[2,16,16], index: 3, kind: input, shape index: {}]   ;;  %s1908_s4 = inlined_call_operand.hbm [shape: f32[2,16,16], index: 4, kind: input, shape index: {}]   ;;  %s1909_s5 = inlined_call_operand.vmem [shape: f32[1,16], index: 5, kind: input, shape index: {}]   ;;  %s1910_s6 = inlined_call_operand.vmem [shape: f32[1,16], index: 6, kind: input, shape index: {}]   ;;  %s1911_s7 = inlined_call_operand.vmem [shape: f32[3,16], index: 7, kind: input, shape index: {}]   ;;  %s1912_s8 = inlined_call_operand.vmem [shape: f32[1,16], index: 8, kind: input, shape index: {}]   ;;  %s1913_s9 = inlined_call_operand.vmem [shape: bf16[16,16], index: 9, kind: input, shape index: {}]   ;;  %s1914_s10 = inlined_call_operand.vmem [shape: f32[1,16], index: 10, kind: input, shape index: {}]   ;;  %s1915_s11 = inlined_call_operand.hbm [shape: f32[2,16,16], index: 11, kind: output, shape index: {}]  }
   0x1   :  { %1937 = sst [smem:[#allocation25_spill]] %s1905_s1 }
   0x2   :  { %1938 = sst [smem:[#allocation26_spill]] %s1907_s3 }
   0x3   :  { %1939 = sst [smem:[#allocation27_spill]] %s1912_s8 }
   0x4   :  { %1940 = sst [smem:[#allocation28_spill]] %s1914_s10 }
   0x5   :  { %1941 = sst [smem:[#allocation29_spill]] %s1915_s11 }
   0x6   :  { %16 = vsyncpa [#allocation3], 0 }
   0x7   :  { %18 = vsyncpa [#allocation3 + $0x1], 0 }
   0x8   :  { %19 = vsyncpa [#allocation6], 0 }
   0x9   :  { %21 = vsyncpa [#allocation6 + $0x1], 0 }
   0xa   :  { %22 = vsyncpa [#allocation9], 0 }
   0xb   :  { %24 = vsyncpa [#allocation9 + $0x1], 0 }
   0xc   :  { %25 = vsyncpa [#allocation4], 0 }
   0xd   :  { %27 = vsyncpa [#allocation4 + $0x1], 0  ;;  %s1521_s17 = smov 0   ;;  %s1523_s18 = smov 0  }
   0xe   :  { %s1525_s19 = smov 0   ;;  %s1527_s20 = smov 0  }
   0xf   :  { %s1529_s21 = smov 0   ;;  %s1531_s22 = smov 0  }
  0x10 LB: > { %1942 = sst [smem:[#allocation16_spill]] %s1427_s17  ;;  %s1552_s23 = sadd.s32 4294967295, %s1447_s22   ;;  %s1447_s22 = sphi %s1531_s22, %s33_s22   ;;  %s1443_s21 = sphi %s1529_s21, %s1984_s21   ;;  %s1439_s20 = sphi %s1527_s20, %s1983_s20   ;;  %s1435_s19 = sphi %s1525_s19, %s1982_s19   ;;  %s1431_s18 = sphi %s1523_s18, %s1986_s18   ;;  %s1427_s17 = sphi %s1521_s17, %s1985_s17  }
  0x11   : > { %1943 = sst [smem:[#allocation17_spill]] %s1435_s19  ;;  %s1060_s24 = sadd.s32 4294967294, %s1447_s22  }
  0x12   : > { %1944 = sst [smem:[#allocation18_spill]] %s1439_s20  ;;  %s45_s25 = sadd.s32 1, %s1443_s21 }
  0x13   : > { %1945 = sst [smem:[#allocation19_spill]] %s1443_s21  ;;  %s54_s26 = sadd.s32 1, %s1435_s19 }
  0x14   : > { %1946 = sst [smem:[#allocation20_spill]] %s1447_s22  ;;  %p47_p0 = scmp.ge.s32.totalorder %s45_s25, 2 }
  0x15   : > { %p61_p1 = scmp.ne.s32.totalorder %s1435_s19, %s1431_s18  ;;  %p62_p2 = scmp.eq.s32.totalorder %s1447_s22, 0 }
  0x16   : > { %p67_p3 = scmp.ne.s32.totalorder %s1431_s18, %s1427_s17  ;;  %s1988_s25 = smov (%p47_p0, %s45_s25), 0 }
  0x17   : > { %1947 = sst [smem:[#allocation21_spill]] %s1988_s25  ;;  %p1564_p4 = por %p62_p2, %p61_p1 }
  0x18   : > { %p68_p5 = scmp.eq.s32.totalorder %s1552_s23, 0  ;;  %s49_s28 = ssub.s32 %s1443_s21, %s1988_s25 }
  0x19   : > { %p347_p6 = scmp.eq.s32.totalorder %s1552_s23, 1  ;;  %p52_p7 = scmp.eq.s32.totalorder %s49_s28, 0 }
  0x1a   : > { %p1572_p8 = por %p68_p5, %p67_p3  ;;  %p353_p10 = scmp.eq.s32.totalorder %s1060_s24, 1 }
  0x1b   : > { %p1576_p9 = por %p347_p6, %p61_p1  ;;  %p1144_p13 = scmp.lt.s32.totalorder %s1447_s22, 2 }
  0x1c   : > { %s1949_s29 = scalar_select %p1572_p8, 1, 0 }
  0x1d   : > { %s1950_s30 = scalar_select %p1576_p9, 1, 0 }
  0x1e   : > { %s1581_s12 = scalar_select %p52_p7, %s1435_s19, %s54_s26  }
  0x1f   : > { %1951 = sst [smem:[#allocation22_spill]] %s1950_s30  ;;  %p1583_p11 = por %p353_p10, %p67_p3 }
  0x20   : > { %1952 = sst [smem:[#allocation23_spill]] %s1581_s12  ;;  %s1590_s14 = sand.u32 1, %s1435_s19  }
  0x21   : > { %s1953_s13 = scalar_select %p1583_p11, 1, 0 }
  0x22   : > { %s1593_s15 = sshll.u32 %s1590_s14, 4  ;;  %s1596_s16 = sshll.u32 %s1443_s21, 8 }
  0x23   : > { %1954 = sst [smem:[#allocation24_spill]] %s1953_s13  ;;  %p1600_p0 = pnand %p1144_p13, %p1564_p4 }
  0x24   : > { %s1924_s26 = sand.u32 1, %s1447_s22   ;;  %s1956_s1 = sld [smem:[#allocation25_spill]] }
  0x25   : > { %s1955_s24 = scalar_select %p1600_p0, 1, 0 }
  0x26   : > { %s418_s19 = scalar_lea.vmem [#allocation5], %s1593_s15  ;;  %s1618_s27 = scalar_lea.sflag [#allocation6], %s1924_s26 }
  0x27   : > { %s427_s21 = sshll.u32 %s418_s19, 4  ;;  %p1624_p4 = pneg %p1600_p0  ;;  %s1613_s21 = int_to_ptr.vmem [resolvable:$true] %s427_s21 }
  0x2a   : > { %s1609_s12 = scalar_lea.hbm %s1956_s1, %s1596_s16  ;;  %s1212_s17 = scalar_lea.hbm %s1956_s1, 512 }
  0x2b   : > { %s1207_s13 = scalar_lea.hbm %s1609_s12, 256  ;;  %p1213_p7 = scmp.lt.u32.totalorder %s1609_s12, %s1956_s1 }
  0x2c   : > { %p1208_p3 = scmp.ne.s32.totalorder %s1609_s12, %s1207_s13  ;;  %p1214_p10 = scmp.lt.u32.totalorder %s1212_s17, %s1207_s13 }
  0x2d   : > { %p1216_p12 = scmp.lt.u32.totalorder %s1207_s13, %s1609_s12 }
  0x2e   : > { %p1210_p5 = pnand %p1624_p4, %p1208_p3  ;;  %p1215_p13 = por %p1214_p10, %p1213_p7 }
  0x30   : > { %p1211_p6 = pneg %p1210_p5  ;;  %p1217_p1 = por %p1216_p12, %p1215_p13 }
  0x32   : > { %p1218_p2 = pnand %p1217_p1, %p1211_p6 }
  0x34   : > { %1221 = shalt.err (!%p1218_p2)
}
  0x35   : > { %s1222_s26 = scalar_lea.vmem %s1613_s21, 256  ;;  %s1449_s28 = smov [#allocation5]  }
  0x36   : > { %p1223_p3 = scmp.ne.s32.totalorder %s1613_s21, %s1222_s26  ;;  %s1227_s19 = sshll.u32 %s1449_s28, 4  ;;  %s1228_s19 = int_to_ptr.vmem [resolvable:$false] %s1227_s19 }
  0x37   : > { %s1229_s11 = scalar_lea.vmem %s1228_s19, 512  ;;  %p1230_p9 = scmp.lt.s32.totalorder %s1613_s21, %s1228_s19 }
  0x38   : > { %p1225_p5 = pnand %p1223_p3, %p1624_p4  ;;  %p1231_p8 = scmp.lt.s32.totalorder %s1229_s11, %s1222_s26 }
  0x3a   : > { %p1226_p11 = pneg %p1225_p5  ;;  %p1232_p7 = por %p1231_p8, %p1230_p9 }
  0x3c   : > { %p1233_p10 = pnand %p1232_p7, %p1226_p11 }
  0x3e   : > { %1236 = shalt.err (!%p1233_p10)
}
  0x3f   : > { %s1927_s17 = smov 128   ;;  %s1929_s30 = smov 8  }
  0x40   : > { %1130 = dma.hbm_to_vmem [thread:$0]  (!%p1600_p0), %s1609_s12, 256, %s1613_s21, %s1618_s27, %s1927_s17, %s1927_s17, %s1929_s30  }
  0x41   : > { %p1958_p8 = scmp.lt.s32.totalorder %s1447_s22, 3  ;;  %p1959_p9 = scmp.ge.s32.totalorder %s1447_s22, 1 }
  0x42   : > { %s1931_s26 = sshll.u32 %s1590_s14, 3  ;;  %s1100_s28 = sadd.s32 128, %s1596_s16 }
  0x43   : > { %p1655_p11 = pnand %p1959_p9, %p1958_p8  ;;  %s1961_s3 = sld [smem:[#allocation26_spill]] }
  0x44   : > { %s465_s10 = scalar_lea.vmem [#allocation8], %s1931_s26  ;;  %s1962_s12 = sand.u32 1, %s1447_s22  }
  0x45   : > { %s1960_s13 = scalar_select %p1655_p11, 1, 0 }
  0x46   : > { %s478_s21 = sshll.u32 %s465_s10, 4  ;;  %s1670_s17 = scalar_lea.sflag [#allocation9], %s1962_s12  ;;  %s479_s21 = int_to_ptr.vmem [resolvable:$true] %s478_s21 }
  0x49   : > { %s1664_s1 = scalar_lea.hbm %s1961_s3, %s1100_s28  ;;  %s1242_s28 = scalar_lea.hbm %s1961_s3, 512 }
  0x4a   : > { %s1237_s30 = scalar_lea.hbm %s1664_s1, 128  ;;  %p1243_p6 = scmp.lt.u32.totalorder %s1664_s1, %s1961_s3 }
  0x4b   : > { %p1238_p12 = scmp.ne.s32.totalorder %s1664_s1, %s1237_s30  ;;  %p1244_p13 = scmp.lt.u32.totalorder %s1242_s28, %s1237_s30 }
  0x4c   : > { %p1246_p5 = scmp.lt.u32.totalorder %s1237_s30, %s1664_s1 }
  0x4d   : > { %p1240_p1 = pnand %p1238_p12, %p1624_p4  ;;  %p1245_p3 = por %p1244_p13, %p1243_p6 }
  0x4f   : > { %p1241_p2 = pneg %p1240_p1  ;;  %p1247_p7 = por %p1246_p5, %p1245_p3 }
  0x51   : > { %p1248_p10 = pnand %p1247_p7, %p1241_p2 }
  0x53   : > { %1251 = shalt.err (!%p1248_p10)
}
  0x54   : > { %s1252_s10 = scalar_lea.vmem %s479_s21, 128  ;;  %s1452_s12 = smov [#allocation8]  }
  0x55   : > { %p1253_p8 = scmp.ne.s32.totalorder %s479_s21, %s1252_s10  ;;  %s1257_s26 = sshll.u32 %s1452_s12, 4  ;;  %s1258_s26 = int_to_ptr.vmem [resolvable:$false] %s1257_s26 }
  0x56   : > { %s1259_s20 = scalar_lea.vmem %s1258_s26, 256  ;;  %p1260_p1 = scmp.lt.s32.totalorder %s479_s21, %s1258_s26 }
  0x57   : > { %p1255_p9 = pnand %p1253_p8, %p1624_p4  ;;  %p1261_p11 = scmp.lt.s32.totalorder %s1259_s20, %s1252_s10 }
  0x59   : > { %p1256_p12 = pneg %p1255_p9  ;;  %p1262_p0 = por %p1261_p11, %p1260_p1 }
  0x5b   : > { %p1263_p6 = pnand %p1262_p0, %p1256_p12 }
  0x5d   : > { %1266 = shalt.err (!%p1263_p6)
}
  0x5e   : > { %p1963_p13 = scmp.ne.s32.totalorder %s1955_s24, 0  ;;  %s1694_s19 = scalar_lea.hbm %s1904_s0, %s1596_s16 }
  0x5f   : > { %s395_s26 = scalar_lea.vmem [#allocation2], %s1593_s15  ;;  %s1701_s12 = scalar_lea.hbm %s1906_s2, %s1596_s16 }
  0x60   : > { %1136 = dma.hbm_to_vmem [thread:$0]  (!%p1963_p13), %s1664_s1, 128, %s479_s21, %s1670_s17  }
  0x61   : > { %s404_s28 = sshll.u32 %s395_s26, 4  ;;  %s1964_s20 = sshll.u32 %s1590_s14, 3  ;;  %s1703_s28 = int_to_ptr.vmem [resolvable:$true] %s404_s28 }
  0x62   : > { %s1707_s1 = scalar_lea.vmem [#allocation7], %s1964_s20  ;;  %s392_s8 = scalar_lea.sflag [#allocation3], %s1590_s14 }
  0x63   : > { %s454_s21 = sshll.u32 %s1707_s1, 4  ;;  %s1267_s30 = scalar_lea.hbm %s1694_s19, 256  ;;  %s455_s21 = int_to_ptr.vmem [resolvable:$true] %s454_s21 }
  0x64   : > { %p1268_p0 = scmp.ne.s32.totalorder %s1694_s19, %s1267_s30  ;;  %s1272_s22 = scalar_lea.hbm %s1904_s0, 512 }
  0x65   : > { %p1273_p3 = scmp.lt.u32.totalorder %s1694_s19, %s1904_s0  ;;  %p1274_p5 = scmp.lt.u32.totalorder %s1272_s22, %s1267_s30 }
  0x66   : > { %p1270_p11 = pnand %p1268_p0, %p1624_p4  ;;  %p1276_p10 = scmp.lt.u32.totalorder %s1267_s30, %s1694_s19 }
  0x67   : > { %p1275_p7 = por %p1274_p5, %p1273_p3 }
  0x68   : > { %p1271_p2 = pneg %p1270_p11 }
  0x69   : > { %p1277_p8 = por %p1276_p10, %p1275_p7 }
  0x6b   : > { %p1278_p9 = pnand %p1277_p8, %p1271_p2 }
  0x6d   : > { %1281 = shalt.err (!%p1278_p9)
}
  0x6e   : > { %s1282_s20 = scalar_lea.vmem %s1703_s28, 256  ;;  %s1453_s3 = smov [#allocation2]  }
  0x6f   : > { %p1283_p12 = scmp.ne.s32.totalorder %s1703_s28, %s1282_s20  ;;  %s1287_s26 = sshll.u32 %s1453_s3, 4  ;;  %s1288_s26 = int_to_ptr.vmem [resolvable:$false] %s1287_s26 }
  0x70   : > { %s1289_s11 = scalar_lea.vmem %s1288_s26, 512  ;;  %p1290_p0 = scmp.lt.s32.totalorder %s1703_s28, %s1288_s26 }
  0x71   : > { %p1285_p1 = pnand %p1283_p12, %p1624_p4  ;;  %p1291_p11 = scmp.lt.s32.totalorder %s1289_s11, %s1282_s20 }
  0x73   : > { %p1286_p6 = pneg %p1285_p1  ;;  %p1292_p3 = por %p1291_p11, %p1290_p0 }
  0x75   : > { %p1293_p5 = pnand %p1292_p3, %p1286_p6 }
  0x77   : > { %1296 = shalt.err (!%p1293_p5)
}
  0x78   : > { %s1965_s22 = smov 8   ;;  %s1966_s30 = smov 128  }
  0x79   : > { %1127 = dma.hbm_to_vmem [thread:$0]  (!%p1963_p13), %s1694_s19, 256, %s1703_s28, %s392_s8, %s1966_s30, %s1966_s30, %s1965_s22  }
  0x7a   : > { %s1297_s10 = scalar_lea.hbm %s1701_s12, 128  ;;  %s1302_s14 = scalar_lea.hbm %s1906_s2, 512 }
  0x7b   : > { %p1298_p2 = scmp.ne.s32.totalorder %s1701_s12, %s1297_s10  ;;  %p1303_p8 = scmp.lt.u32.totalorder %s1701_s12, %s1906_s2 }
  0x7c   : > { %p1304_p9 = scmp.lt.u32.totalorder %s1302_s14, %s1297_s10  ;;  %p1306_p1 = scmp.lt.u32.totalorder %s1297_s10, %s1701_s12 }
  0x7d   : > { %p1300_p7 = pnand %p1298_p2, %p1624_p4 }
  0x7e   : > { %p1305_p12 = por %p1304_p9, %p1303_p8 }
  0x7f   : > { %p1301_p10 = pneg %p1300_p7 }
  0x80   : > { %p1307_p6 = por %p1306_p1, %p1305_p12 }
  0x82   : > { %p1308_p0 = pnand %p1307_p6, %p1301_p10 }
  0x84   : > { %1311 = shalt.err (!%p1308_p0)
}
  0x85   : > { %s1312_s19 = scalar_lea.vmem %s455_s21, 128  ;;  %s1454_s28 = smov [#allocation7]  }
  0x86   : > { %p1313_p11 = scmp.ne.s32.totalorder %s455_s21, %s1312_s19  ;;  %s1317_s1 = sshll.u32 %s1454_s28, 4  ;;  %s1318_s1 = int_to_ptr.vmem [resolvable:$false] %s1317_s1 }
  0x87   : > { %s1319_s8 = scalar_lea.vmem %s1318_s1, 256  ;;  %p1320_p2 = scmp.lt.s32.totalorder %s455_s21, %s1318_s1 }
  0x88   : > { %p1315_p3 = pnand %p1313_p11, %p1624_p4  ;;  %p1321_p7 = scmp.lt.s32.totalorder %s1319_s8, %s1312_s19 }
  0x8a   : > { %p1316_p5 = pneg %p1315_p3  ;;  %p1322_p13 = por %p1321_p7, %p1320_p2 }
  0x8c   : > { %p1323_p8 = pnand %p1322_p13, %p1316_p5 }
  0x8e   : > { %1326 = shalt.err (!%p1323_p8)
}
  0x8f   : > { %p1967_p9 = scmp.ne.s32.totalorder %s1955_s24, 0  ;;  %s1761_s3 = scalar_lea.hbm %s1908_s4, %s1596_s16 }
  0x90   : > { %s489_s14 = scalar_lea.vmem [#allocation10], %s1593_s15  ;;  %s1327_s11 = scalar_lea.hbm %s1761_s3, 256 }
  0x91   : > { %1133 = dma.hbm_to_vmem [thread:$0]  (!%p1967_p9), %s1701_s12, 128, %s455_s21, %s1618_s27  }
  0x92   : > { %s498_s26 = sshll.u32 %s489_s14, 4  ;;  %p1328_p13 = scmp.ne.s32.totalorder %s1761_s3, %s1327_s11  ;;  %s1764_s26 = int_to_ptr.vmem [resolvable:$true] %s498_s26 }
  0x93   : > { %s1332_s12 = scalar_lea.hbm %s1908_s4, 512  ;;  %p1333_p1 = scmp.lt.u32.totalorder %s1761_s3, %s1908_s4 }
  0x94   : > { %p1330_p10 = pnand %p1328_p13, %p1624_p4  ;;  %p1334_p6 = scmp.lt.u32.totalorder %s1332_s12, %s1327_s11 }
  0x95   : > { %p1336_p11 = scmp.lt.u32.totalorder %s1327_s11, %s1761_s3 }
  0x96   : > { %p1331_p12 = pneg %p1330_p10  ;;  %p1335_p0 = por %p1334_p6, %p1333_p1 }
  0x98   : > { %p1337_p3 = por %p1336_p11, %p1335_p0 }
  0x9a   : > { %p1338_p5 = pnand %p1337_p3, %p1331_p12 }
  0x9c   : > { %1341 = shalt.err (!%p1338_p5)
}
  0x9d   : > { %s1342_s15 = scalar_lea.vmem %s1764_s26, 256  ;;  %s1455_s28 = smov [#allocation10]  }
  0x9e   : > { %p1343_p2 = scmp.ne.s32.totalorder %s1764_s26, %s1342_s15  ;;  %s1347_s1 = sshll.u32 %s1455_s28, 4  ;;  %s1348_s1 = int_to_ptr.vmem [resolvable:$false] %s1347_s1 }
  0x9f   : > { %s1349_s8 = scalar_lea.vmem %s1348_s1, 512  ;;  %p1350_p13 = scmp.lt.s32.totalorder %s1764_s26, %s1348_s1 }
  0xa0   : > { %p1345_p7 = pnand %p1343_p2, %p1624_p4  ;;  %p1351_p10 = scmp.lt.s32.totalorder %s1349_s8, %s1342_s15 }
  0xa2   : > { %p1346_p8 = pneg %p1345_p7  ;;  %p1352_p1 = por %p1351_p10, %p1350_p13 }
  0xa4   : > { %p1353_p6 = pnand %p1352_p1, %p1346_p8 }
  0xa6   : > { %1356 = shalt.err (!%p1353_p6)
}
  0xa7   : > { %1139 = dma.hbm_to_vmem [thread:$0]  (!%p1967_p9), %s1761_s3, 256, %s1764_s26, %s1670_s17, %s1966_s30, %s1966_s30, %s1965_s22  }
  0xa8   : > { %p1968_p4 = scmp.ne.s32.totalorder %s1960_s13, 0 }
  0xa9   : > { %s1794_s25 = sand.u32 (!%p1968_p4), 1, %s1431_s18   ;;  %p1969_p12 = scmp.ne.s32.totalorder (!%p1968_p4), %s1949_s29, 0 }
  0xaa   : > { %510 = sbr.rel (%p1968_p4) target bundleno = 754 (0x2f2), region = 64  ;;  %s1797_s10 = sshll.u32 (!%p1968_p4), %s1794_s25, 4 }
  0xab   : > { %s513_s24 = scalar_lea.sflag (!%p1968_p4), [#allocation3], %s1794_s25  ;;  %s516_s20 = scalar_lea.vmem (!%p1968_p4), [#allocation2], %s1797_s10 }
  0xb1   : > { %1410 = dma.done.wait (%p1969_p12), %s513_s24, 256  }
  0xb2   : > { %1412 = vsyncadd (%p1969_p12), %s513_s24, 4294967040  ;;  %s521_s17 = sand.u32 1, %s1552_s23   ;;  %s525_s22 = scalar_lea.vmem [#allocation5], %s1797_s10 }
  0xb3   : > { %s522_s13 = scalar_lea.sflag [#allocation6], %s521_s17 }
  0xb4   : > { %1414 = dma.done.wait (%p1969_p12), %s522_s13, 384  }
  0xb5   : > { %1416 = vsyncadd (%p1969_p12), %s522_s13, 4294966912  ;;  %s1081_s30 = sshll.u32 %s1794_s25, 3  ;;  %s540_s14 = scalar_lea.sflag [#allocation9], %s521_s17 }
  0xb6   : > { %s534_s3 = scalar_lea.vmem [#allocation7], %s1081_s30  ;;  %s543_s26 = scalar_lea.vmem [#allocation8], %s1081_s30 }
  0xb7   : > { %1418 = dma.done.wait (%p1969_p12), %s540_s14, 384  }
  0xb8   : > { %1420 = vsyncadd (%p1969_p12), %s540_s14, 4294966912  ;;  %v624_v0 = vld [vmem:[%s525_s22] sm:$0xff]  ;;  %vm630_vm0 = vcmask 1040384   ;;  %vm642_vm1 = vcmask 130048   ;;  %v625_v2 = vld [vmem:[%s525_s22 + $0x8] sm:$0xff]  ;;  %vm649_vm2 = vcmask 123904   ;;  %v706_v37 = vlaneseq }
  0xb9   : > { %v626_v1 = vld [vmem:[%s534_s3 + $0x7] sm:$0x1]  ;;  %v631_v3 = vrot.slane %v624_v0, 7  ;;  %v627_v4 = vld [vmem:[%s543_s26] sm:$0x1]  ;;  %v632_v5 = vrot.slane %v625_v2, 7 }
  0xba   : > { %v638_v6 = vrot.slane %v627_v4, 7  ;;  %v1200_v28 = vld [vmem:[%s1913_s9] sm:$0xff]   ;;  %v1456_v29 = vmov 0.0   ;;  %vm1457_vm3 = vmmov 0   ;;  %v707_v40 = vshrl.u32 %v706_v37, 7  ;;  %s1970_s1 = sld [smem:[#allocation27_spill]] }
  0xbb   : > { %v640_v7 = vsel %vm630_vm0, %v626_v1, %v631_v3  ;;  %v633_v8 = vsel %vm630_vm0, %v631_v3, %v632_v5  ;;  %1106 = vmatprep.subr.bf16.mxu0 %v1456_v29  ;;  %1108 = vmatprep.mubr.msk.bf16.mxu0 %vm1457_vm3, %v1456_v29  ;;  %v1085_v42 = vld [vmem:[%s1909_s5] ss:$0 sm:$0xff]  ;;  %vm751_vm6 = vcmask 1046528   ;;  %vm771_vm7 = vcmask 1045504   ;;  %s1971_s8 = sld [smem:[#allocation18_spill]]  ;;  %s1972_s13 = sld [smem:[#allocation28_spill]] }
  0xbc   : > { %v643_v9 = vsel %vm642_vm1, %v640_v7, 0.0  ;;  %v641_v10 = vsel %vm630_vm0, %v632_v5, %v638_v6  ;;  %v646_v11 = vsel %vm642_vm1, %v633_v8, 0.0  ;;  %1107 = vmatpush3.bf16.msra.mxu0 %v1200_v28  ;;  %v709_v43 = vadd.s32 16, %v707_v40  ;;  %v1086_v46 = vld [vmem:[%s1910_s6] ss:$0 sm:$0xff]  ;;  %s552_s22 = scalar_lea.vmem [#allocation10], %s1797_s10 }
  0xbd   : > { %644 = vadd.xlane.f32.xlu0 %v643_v9  ;;  %647 = vadd.xlane.f32.xlu1 %v646_v11  ;;  %v650_v12 = vsel %vm649_vm2, %v641_v10, 0.0  ;;  %v711_v44 = vadd.s32 4294967295, %v707_v40  ;;  %v743_v47 = vsub.s32 1, %v707_v40  ;;  %v732_v49 = vld [vmem:[%s1911_s7] sm:$0x7]  ;;  %v763_v52 = vsub.s32 2, %v707_v40 }
  0xbe   : > { %v713_v51 = vadd.s32 4294967295, %v709_v43  ;;  %v735_v60 = vsub.s32 0, %v707_v40  ;;  %s1973_s30 = sld [smem:[#allocation22_spill]]  ;;  %s610_s14 = scalar_lea.vmem [#allocation11], %s1797_s10  ;;  %v855_v40 = vld [vmem:[%s516_s20 + $0x8] sm:$0xff] }
  0xbf   : > { %vm714_vm4 = vcmp.ge.s32.totalorder %v711_v44, 0  ;;  %v744_v56 = vrot.slane %v732_v49, %v743_v47  ;;  %v764_v62 = vrot.slane %v732_v49, %v763_v52  ;;  %s876_s26 = sshll.u32 %s610_s14, 4  ;;  %s1974_s11 = sld [smem:[#allocation29_spill]]  ;;  %s1853_s26 = int_to_ptr.vmem [resolvable:$true] %s876_s26 }
  0xc0   : > { %vm719_vm5 = vcmp.lt.s32.totalorder %v713_v51, 16  ;;  %v736_v3 = vrot.slane %v732_v49, %v735_v60  ;;  %s861_s27 = scalar_lea.sflag [#allocation4], %s1794_s25  ;;  %s1357_s10 = scalar_lea.vmem %s1853_s26, 256 }
  0xc1   : > { %651 = vadd.xlane.f32.xlu0 %v650_v12  ;;  %v1088_v29 = vld [vmem:[%s1972_s13] ss:$0 sm:$0xff]  ;;  %s1102_s3 = sshll.u32 %s1971_s8, 8  ;;  %p1358_p9 = scmp.ne.s32.totalorder %s1853_s26, %s1357_s10 }
  0xc4   : > { %p1975_p0 = scmp.ne.s32.totalorder %s1973_s30, 0 }
  0xc5   : > { %s1851_s19 = scalar_lea.hbm %s1974_s11, %s1102_s3 }
  0xc6   : > { %p1359_p11 = pnand %p1358_p9, %p1975_p0 }
  0xc8   : > { %p1360_p3 = pneg %p1359_p11 }
 0x14a   : > { %v645_v13 = vpop.xlane.xlu0 %644  ;;  %v648_v14 = vpop.xlane.xlu1 %647 }
 0x14b   : > { %v654_v15 = vmul.f32 0.0625, %v645_v13  ;;  %v655_v16 = vmul.f32 0.0625, %v648_v14 }
 0x14d   : > { %v657_v17 = vsub.f32 %v640_v7, %v654_v15  ;;  %v658_v18 = vsub.f32 %v633_v8, %v655_v16 }
 0x14e   : > { %v652_v19 = vpop.xlane.xlu0 %651 }
 0x14f   : > { %v656_v20 = vmul.f32 0.0625, %v652_v19  ;;  %v660_v21 = vmul.f32 %v657_v17, %v657_v17  ;;  %v661_v22 = vmul.f32 %v658_v18, %v658_v18 }
 0x151   : > { %v659_v23 = vsub.f32 %v641_v10, %v656_v20  ;;  %v663_v24 = vsel %vm642_vm1, %v660_v21, 0.0  ;;  %v666_v26 = vsel %vm642_vm1, %v661_v22, 0.0 }
 0x152   : > { %664 = vadd.xlane.f32.xlu1 %v663_v24 }
 0x153   : > { %v662_v25 = vmul.f32 %v659_v23, %v659_v23 }
 0x155   : > { %v669_v27 = vsel %vm649_vm2, %v662_v25, 0.0 }
 0x156   : > { %670 = vadd.xlane.f32.xlu0 %v669_v27  ;;  %667 = vadd.xlane.f32.xlu1 %v666_v26 }
 0x1df   : > { %v665_v30 = vpop.xlane.xlu1 %664 }
 0x1e0   : > { %v672_v31 = vmul.f32 0.0625, %v665_v30 }
 0x1e2   : > { %v675_v32 = vadd.f32 1e-12, %v672_v31  ;;  %v850_v31 = vld [vmem:[%s552_s22] sm:$0xff] }
 0x1e3   : > { %v671_v33 = vpop.xlane.xlu0 %670  ;;  %v668_v34 = vpop.xlane.xlu1 %667 }
 0x1e4   : > { %1201 = vrsqrt.f32 %v675_v32  ;;  %v674_v35 = vmul.f32 0.0625, %v671_v33  ;;  %v673_v36 = vmul.f32 0.0625, %v668_v34  ;;  %v854_v34 = vld [vmem:[%s516_s20] sm:$0xff]  ;;  %s1458_s20 = smov [#allocation11]  }
 0x1e5   : > { %s1361_s12 = sshll.u32 %s1458_s20, 4  ;;  %s1362_s12 = int_to_ptr.vmem [resolvable:$false] %s1361_s12 }
 0x1e6   : > { %v677_v38 = vadd.f32 1e-12, %v674_v35  ;;  %v676_v39 = vadd.f32 1e-12, %v673_v36  ;;  %v851_v36 = vld [vmem:[%s552_s22 + $0x8] sm:$0xff]  ;;  %s1363_s21 = scalar_lea.vmem %s1362_s12, 512  ;;  %p1364_p5 = scmp.lt.s32.totalorder %s1853_s26, %s1362_s12 }
 0x1e7   : > { %p1365_p2 = scmp.lt.s32.totalorder %s1363_s21, %s1357_s10 }
 0x1e8   : > { %1203 = vrsqrt.f32 %v677_v38 }
 0x1e9   : > { %1205 = vrsqrt.f32 %v676_v39  ;;  %p1366_p7 = por %p1365_p2, %p1364_p5 }
 0x1eb   : > { %p1367_p8 = pnand %p1366_p7, %p1360_p3 }
 0x1ee   : > { %v1202_v41 = vpop.eup %1201 }
 0x1ef   : > { %v681_v45 = vmul.f32 %v1202_v41, %v657_v17 }
 0x1f1   : > { %v691_v48 = vmul.f32 %v1085_v42, %v681_v45 }
 0x1f2   : > { %v1204_v50 = vpop.eup %1203 }
 0x1f3   : > { %v1206_v53 = vpop.eup %1205  ;;  %v701_v54 = vadd.f32 %v1086_v46, %v691_v48  ;;  %v683_v55 = vmul.f32 %v1204_v50, %v659_v23  ;;  %v1087_v23 = vld [vmem:[%s1970_s1] ss:$0 sm:$0xff] }
 0x1f4   : > { %v682_v57 = vmul.f32 %v1206_v53, %v658_v18 }
 0x1f5   : > { %v693_v58 = vmul.f32 %v1085_v42, %v683_v55  ;;  %v729_v59 = vsel %vm714_vm4, %v701_v54, 0.0 }
 0x1f6   : > { %v692_v61 = vmul.f32 %v1085_v42, %v682_v57  ;;  %v745_v1 = vmul.f32 %v744_v56, %v729_v59  ;;  %v765_v6 = vmul.f32 %v764_v62, %v729_v59  ;;  %v737_v13 = vmul.f32 %v736_v3, %v729_v59 }
 0x1f7   : > { %v703_v63 = vadd.f32 %v1086_v46, %v693_v58 }
 0x1f8   : > { %v702_v0 = vadd.f32 %v1086_v46, %v692_v61  ;;  %v752_v9 = vrot.slane %v745_v1, 1  ;;  %v772_v18 = vrot.slane %v765_v6, 2 }
 0x1f9   : > { %v731_v2 = vsel %vm719_vm5, %v703_v63, 0.0 }
 0x1fa   : > { %v747_v4 = vmul.f32 %v744_v56, %v731_v2  ;;  %v746_v5 = vmul.f32 %v744_v56, %v702_v0  ;;  %v766_v7 = vmul.f32 %v764_v62, %v702_v0  ;;  %v767_v8 = vmul.f32 %v764_v62, %v731_v2 }
 0x1fb   : > { %v738_v14 = vmul.f32 %v736_v3, %v702_v0 }
 0x1fc   : > { %v753_v10 = vrot.slane %v746_v5, 1  ;;  %v755_v11 = vrot.slane %v747_v4, 1  ;;  %v773_v12 = vrot.slane %v766_v7, 2  ;;  %v775_v15 = vrot.slane %v767_v8, 2 }
 0x1fe   : > { %v754_v16 = vsel %vm751_vm6, %v752_v9, %v753_v10  ;;  %v756_v17 = vsel %vm751_vm6, %v753_v10, %v755_v11  ;;  %v774_v21 = vsel %vm771_vm7, %v772_v18, %v773_v12  ;;  %v776_v22 = vsel %vm771_vm7, %v773_v12, %v775_v15 }
 0x1ff   : > { %v759_v19 = vadd.f32 %v754_v16, %v737_v13  ;;  %v760_v20 = vadd.f32 %v756_v17, %v738_v14 }
 0x201   : > { %v779_v24 = vadd.f32 %v774_v21, %v759_v19  ;;  %v780_v25 = vadd.f32 %v776_v22, %v760_v20 }
 0x203   : > { %v788_v26 = vadd.f32 %v1087_v23, %v779_v24  ;;  %v789_v27 = vadd.f32 %v1087_v23, %v780_v25 }
 0x205   : > { %v790_v28 = vpack.c.bf16 %v789_v27, %v788_v26 }
 0x207   : > { %1109 = vmatmul.mubr.msk.bf16.vlgmr.msra.gmra.mrb[0].mxu0 %vm642_vm1, %v790_v28 }
 0x2da   : > { %v843_v30 = vpop.f32.mrb[0].mxu0 }
 0x2db   : > { %v844_v32 = vadd.f32 %v1088_v29, %v843_v30  ;;  %v1110_v33 = vpop.f32.mrb[1].mxu0 }
 0x2dc   : > { %v846_v35 = vpop.f32.mrb[2].mxu0 }
 0x2dd   : > { %v852_v37 = vadd.f32 %v850_v31, %v844_v32  ;;  %v847_v38 = vadd.f32 %v1088_v29, %v846_v35  ;;  %v1111_v39 = vpop.f32.mrb[3].mxu0 }
 0x2df   : > { %v856_v41 = vmul.f32 %v854_v34, %v852_v37  ;;  %v853_v42 = vadd.f32 %v851_v36, %v847_v38 }
 0x2e1   : > { %858 = vst.msk [vmem:[%s610_s14] sm:$0xff] %vm642_vm1, %v856_v41  ;;  %v857_v43 = vmul.f32 %v855_v40, %v853_v42 }
 0x2e3   : > { %859 = vst.msk [vmem:[%s610_s14 + $0x8] sm:$0xff] %vm642_vm1, %v857_v43 }
 0x2e4   : > { %1370 = shalt.err (!%p1367_p8)
}
 0x2e5   : > { %s1371_s16 = scalar_lea.hbm %s1851_s19, 256  ;;  %s1375_s1 = scalar_lea.hbm %s1974_s11, 512 }
 0x2e6   : > { %p1372_p13 = scmp.ne.s32.totalorder %s1851_s19, %s1371_s16  ;;  %p1376_p6 = scmp.lt.u32.totalorder %s1851_s19, %s1974_s11 }
 0x2e7   : > { %p1377_p4 = scmp.lt.u32.totalorder %s1375_s1, %s1371_s16  ;;  %p1379_p9 = scmp.lt.u32.totalorder %s1371_s16, %s1851_s19 }
 0x2e8   : > { %p1373_p10 = pnand %p1372_p13, %p1975_p0 }
 0x2e9   : > { %p1378_p12 = por %p1377_p4, %p1376_p6 }
 0x2ea   : > { %p1374_p1 = pneg %p1373_p10 }
 0x2eb   : > { %p1380_p11 = por %p1379_p9, %p1378_p12 }
 0x2ed   : > { %p1381_p3 = pnand %p1380_p11, %p1374_p1 }
 0x2ef   : > { %1384 = shalt.err (!%p1381_p3)
}
 0x2f0   : > { %s1459_s17 = smov 128   ;;  %s1460_s13 = smov 8  }
 0x2f1   : > { %1122 = dma.vmem_to_hbm [thread:$0]  (%p1975_p0), %s1853_s26, 256, %s1851_s19, %s861_s27, %s1459_s17, %s1459_s17, %s1460_s13  }
 0x2f2 PF: > { %s1976_s22 = sld [smem:[#allocation16_spill]]  ;;  %s1977_s3 = sld [smem:[#allocation24_spill]] }
 0x2f3   : > { %s1978_s14 = sld [smem:[#allocation20_spill]] }
 0x2f8   : > { %s891_s23 = sand.u32 1, %s1976_s22   ;;  %p1979_p5 = scmp.ne.s32.totalorder %s1977_s3, 0 }
 0x2f9   : > { %p1980_p2 = scmp.ge.s32.totalorder %s1978_s14, 2  ;;  %s892_s29 = scalar_lea.sflag [#allocation4], %s891_s23 }
 0x2fb   : > { %p1141_p7 = pnand %p1980_p2, %p1979_p5 }
 0x2fd   : > { %1422 = dma.done.wait (!%p1141_p7), %s892_s29, 256  }
 0x2fe   : > { %1424 = vsyncadd (!%p1141_p7), %s892_s29, 4294967040  ;;  %s33_s22 = sadd.s32 1, %s1978_s14   ;;  %s1981_s10 = sld [smem:[#allocation17_spill]] }
 0x2ff   : > { %p30_p8 = scmp.ge.s32.totalorder %s33_s22, 4   ;;  %s1982_s19 = sld [smem:[#allocation23_spill]] }
 0x300   : > { %s1983_s20 = sld [smem:[#allocation19_spill]]  ;;  %s1984_s21 = sld [smem:[#allocation21_spill]] }
 0x301   : > { %s1985_s17 = smov %s1431_s18  ;;  %32 = sbr.rel (!%p30_p8) target bundleno = 16 (0x10), region = 157 }
 0x304   : > { %s1986_s18 = smov %s1981_s10 }
 0x308   :  { %897 = vsyncpa [#allocation3], 1 }
 0x309   :  { %899 = vsyncpa [#allocation3 + $0x1], 1 }
 0x30a   :  { %900 = vsyncpa [#allocation6], 1 }
 0x30b   :  { %902 = vsyncpa [#allocation6 + $0x1], 1 }
 0x30c   :  { %903 = vsyncpa [#allocation9], 1 }
 0x30d   :  { %905 = vsyncpa [#allocation9 + $0x1], 1 }
 0x30e   :  { %906 = vsyncpa [#allocation4], 1 }
 0x30f   :  { %908 = vsyncpa [#allocation4 + $0x1], 1 }

</bundles_post_ra>
